<compile_context>
chip_gen: v6e
topology: v6e:2x2x1
jax: 0.10.0
libtpu: 0.0.40
codegen_flags: <defaults>
</compile_context>

<pallas_src>
import functools

import jax
import jax.numpy as jnp
from jax.experimental import pallas as pl
from jax.experimental.pallas import tpu as pltpu

_LANE = 128
_SUBLANE = 8


def _round_up(n, m):
    return ((n + m - 1) // m) * m


def paper_fnn_kernel(x_ref, w1t_ref, b1_ref, w2t_ref, b2_ref, o_ref):
    # Hidden layer: (tb, D) @ (D, H) -> (tb, H). Weights arrive pre-transposed
    # and pre-cast to bf16; x is cast in-kernel (VPU has slack, and this keeps
    # the HBM read at the caller's dtype). f32 MXU accumulation.
    x = x_ref[...].astype(jnp.bfloat16)
    h = jnp.dot(x, w1t_ref[...], preferred_element_type=jnp.float32)
    h = jnp.maximum(h + b1_ref[...], 0.0)

    # Output layer: (tb, H) @ (H, C_pad) -> (tb, C_pad); biases added in f32,
    # stored as bf16 (halves the dominant HBM writeback stream).
    out = jnp.dot(h.astype(jnp.bfloat16), w2t_ref[...],
                  preferred_element_type=jnp.float32)
    o_ref[...] = (out + b2_ref[...]).astype(o_ref.dtype)


@functools.partial(jax.jit, static_argnames=("block_b",))
def paper_fnn(x, w1, b1, w2, b2, *, block_b=8192):
    """Forward pass of PaperFNN.

    Args:
      x:  (B, input_dim)     float32 or bfloat16 (bf16 halves the input HBM read)
      w1: (128, input_dim)   PyTorch nn.Linear layout (out, in)
      b1: (128,)
      w2: (num_classes, 128) PyTorch nn.Linear layout (out, in)
      b2: (num_classes,)
      block_b: max batch tile. The actual tile is capped so the grid keeps >=4
        steps (megacore sharding on v7x) and rounded to the sublane (8).
    Returns:
      (B, num_classes) float32
    """
    B, D = x.shape
    H = w1.shape[0]
    C = w2.shape[0]

    # Lane-dense output slab: class dim padded up to a multiple of 128 so the
    # stores are full-lane vst (emitted in bf16 to halve the writeback).
    C_pad = _round_up(max(C, _LANE), _LANE)

    # Batch tile: as large as block_b allows but keep >= ~4 grid steps, rounded
    # to the sublane. No explicit padding of x — ragged last tile is clipped.
    tb = max(_SUBLANE, min(block_b, _round_up(-(-B // 4), _SUBLANE)))
    grid = (pl.cdiv(B, tb),)

    # One-time (tiny) wrapper-side weight transforms: transpose to (in, out)
    # and cast to bf16 so the kernel uses plain row-major MXU contractions.
    w1t = w1.T.astype(jnp.bfloat16)                                    # (D, H)
    w2t = jnp.pad(w2.T, ((0, 0), (0, C_pad - C))).astype(jnp.bfloat16)  # (H, C_pad)
    b1_r = b1.reshape(1, H).astype(jnp.float32)
    b2_r = jnp.pad(b2, ((0, C_pad - C),)).reshape(1, C_pad).astype(jnp.float32)

    out_padded = pl.pallas_call(
        paper_fnn_kernel,
        out_shape=jax.ShapeDtypeStruct((B, C_pad), jnp.bfloat16),
        grid=grid,
        in_specs=[
            pl.BlockSpec((tb, D), lambda i: (i, 0)),        # x: batch-tiled
            pl.BlockSpec((D, H), lambda i: (0, 0)),         # w1ᵀ: VMEM-resident
            pl.BlockSpec((1, H), lambda i: (0, 0)),         # b1
            pl.BlockSpec((H, C_pad), lambda i: (0, 0)),     # w2ᵀ (class-padded)
            pl.BlockSpec((1, C_pad), lambda i: (0, 0)),     # b2 (class-padded)
        ],
        out_specs=pl.BlockSpec((tb, C_pad), lambda i: (i, 0)),
        compiler_params=pltpu.CompilerParams(
            dimension_semantics=("parallel",),   # v7x: shard batch over 2 TCs
            vmem_limit_bytes=32 * 1024 * 1024,   # headroom for tb=8192 on v5e
        ),
    )(x, w1t, b1_r, w2t, b2_r)

    # Column slice (reads only the C useful lanes) + cast back to f32.
    return out_padded[:, :C].astype(jnp.float32)


def _reference(x, w1, b1, w2, b2):
    return jnp.maximum(x @ w1.T + b1, 0.0) @ w2.T + b2


if __name__ == "__main__":
    input_dim = 32
    num_classes = 2

    key = jax.random.PRNGKey(0)
    kx, kw1, kb1, kw2, kb2, kx2 = jax.random.split(key, 6)

    # Deterministic synthetic parameters (shapes per PyTorch nn.Linear).
    w1 = jax.random.normal(kw1, (128, input_dim), dtype=jnp.float32) * 0.1
    b1 = jax.random.normal(kb1, (128,), dtype=jnp.float32) * 0.1
    w2 = jax.random.normal(kw2, (num_classes, 128), dtype=jnp.float32) * 0.1
    b2 = jax.random.normal(kb2, (num_classes,), dtype=jnp.float32) * 0.1

    # Case 1: small batch (single grid step).
    x = jax.random.normal(kx, (8, input_dim), dtype=jnp.float32)
    out = paper_fnn(x, w1, b1, w2, b2)
    jax.block_until_ready(out)
    ref = _reference(x, w1, b1, w2, b2)
    assert out.shape == (8, num_classes)
    # bf16 MXU operands + bf16 output store -> looser tolerance than pure f32.
    assert jnp.allclose(out, ref, atol=5e-2, rtol=5e-2)

    # Case 2: ragged batch, multiple grid steps (exercises cdiv grid + clipped
    # edge blocks, i.e. the no-padding path).
    x2 = jax.random.normal(kx2, (200, input_dim), dtype=jnp.float32)
    out2 = paper_fnn(x2, w1, b1, w2, b2, block_b=64)
    jax.block_until_ready(out2)
    ref2 = _reference(x2, w1, b1, w2, b2)
    assert out2.shape == (200, num_classes)
    assert jnp.allclose(out2, ref2, atol=5e-2, rtol=5e-2)

    print("KERNEL_OK")
</pallas_src>

<mosaic_0001>
module attributes {stable_mosaic.version = 11 : i64} {
  func.func @paper_fnn_kernel(%arg0: i32, %arg1: memref<8x32xf32, #tpu.memory_space<vmem>>, %arg2: memref<32x128xbf16, #tpu.memory_space<vmem>>, %arg3: memref<1x128xf32, #tpu.memory_space<vmem>>, %arg4: memref<128x128xbf16, #tpu.memory_space<vmem>>, %arg5: memref<1x128xf32, #tpu.memory_space<vmem>>, %arg6: memref<8x128xbf16, #tpu.memory_space<vmem>>) attributes {dimension_semantics = [#tpu.dimension_semantics<parallel>], iteration_bounds = array<i64: 1>, scalar_prefetch = 0 : i64, scratch_operands = 0 : i64, tpu.core_type = #tpu.core_type<tc>, window_params = [{transform_indices = @transform_0, window_bounds = array<i64: 8, 32>}, {pipeline_mode = #tpu.pipeline_mode<synchronous>, transform_indices = @transform_1, window_bounds = array<i64: 32, 128>}, {pipeline_mode = #tpu.pipeline_mode<synchronous>, transform_indices = @transform_2, window_bounds = array<i64: 1, 128>}, {pipeline_mode = #tpu.pipeline_mode<synchronous>, transform_indices = @transform_3, window_bounds = array<i64: 128, 128>}, {pipeline_mode = #tpu.pipeline_mode<synchronous>, transform_indices = @transform_4, window_bounds = array<i64: 1, 128>}, {transform_indices = @transform_5, window_bounds = array<i64: 8, 128>}]} {
    %c0 = arith.constant 0 : index
    %c0_0 = arith.constant 0 : index
    %0 = vector.load %arg1[%c0, %c0_0] : memref<8x32xf32, #tpu.memory_space<vmem>>, vector<8x32xf32>
    %1 = arith.truncf %0 : vector<8x32xf32> to vector<8x32xbf16>
    %c0_1 = arith.constant 0 : index
    %c0_2 = arith.constant 0 : index
    %2 = vector.load %arg2[%c0_1, %c0_2] : memref<32x128xbf16, #tpu.memory_space<vmem>>, vector<32x128xbf16>
    %cst = arith.constant dense<0.000000e+00> : vector<8x128xf32>
    %3 = tpu.matmul %1, %2, %cst {dimension_numbers = #tpu.dot_dimension_numbers<[1], [0], [0], [1], [0, 0, 1, 1], [], []>} : vector<8x32xbf16>, vector<32x128xbf16>, vector<8x128xf32> -> vector<8x128xf32>
    %c0_3 = arith.constant 0 : index
    %c0_4 = arith.constant 0 : index
    %4 = vector.load %arg3[%c0_3, %c0_4] : memref<1x128xf32, #tpu.memory_space<vmem>>, vector<1x128xf32>
    %5 = vector.broadcast %4 : vector<1x128xf32> to vector<8x128xf32>
    %6 = arith.addf %3, %5 : vector<8x128xf32>
    %cst_5 = arith.constant 0.000000e+00 : f32
    %7 = vector.broadcast %cst_5 : f32 to vector<8x128xf32>
    %8 = arith.maximumf %6, %7 : vector<8x128xf32>
    %9 = arith.truncf %8 : vector<8x128xf32> to vector<8x128xbf16>
    %c0_6 = arith.constant 0 : index
    %c0_7 = arith.constant 0 : index
    %10 = vector.load %arg4[%c0_6, %c0_7] : memref<128x128xbf16, #tpu.memory_space<vmem>>, vector<128x128xbf16>
    %cst_8 = arith.constant dense<0.000000e+00> : vector<8x128xf32>
    %11 = tpu.matmul %9, %10, %cst_8 {dimension_numbers = #tpu.dot_dimension_numbers<[1], [0], [0], [1], [0, 0, 1, 1], [], []>} : vector<8x128xbf16>, vector<128x128xbf16>, vector<8x128xf32> -> vector<8x128xf32>
    %c0_9 = arith.constant 0 : index
    %c0_10 = arith.constant 0 : index
    %12 = vector.load %arg5[%c0_9, %c0_10] : memref<1x128xf32, #tpu.memory_space<vmem>>, vector<1x128xf32>
    %13 = vector.broadcast %12 : vector<1x128xf32> to vector<8x128xf32>
    %14 = arith.addf %11, %13 : vector<8x128xf32>
    %15 = arith.truncf %14 : vector<8x128xf32> to vector<8x128xbf16>
    %c0_11 = arith.constant 0 : index
    %c0_12 = arith.constant 0 : index
    %16 = vector.load %arg6[%c0_11, %c0_12] : memref<8x128xbf16, #tpu.memory_space<vmem>>, vector<8x128xbf16>
    tpu.vector_store %arg6[%c0_11, %c0_12], %15 {strides = array<i32>} : memref<8x128xbf16, #tpu.memory_space<vmem>>, vector<8x128xbf16>,
    return
  }
  func.func @transform_0(%arg0: i32) -> (i32, i32) {
    %c0_i32 = arith.constant 0 : i32
    %c0_i32_0 = arith.constant 0 : i32
    return %arg0, %c0_i32 : i32, i32
  }
  func.func @transform_1(%arg0: i32) -> (i32, i32) {
    %c0_i32 = arith.constant 0 : i32
    %c0_i32_0 = arith.constant 0 : i32
    %c0_i32_1 = arith.constant 0 : i32
    return %c0_i32, %c0_i32_0 : i32, i32
  }
  func.func @transform_2(%arg0: i32) -> (i32, i32) {
    %c0_i32 = arith.constant 0 : i32
    %c0_i32_0 = arith.constant 0 : i32
    %c0_i32_1 = arith.constant 0 : i32
    return %c0_i32, %c0_i32_0 : i32, i32
  }
  func.func @transform_3(%arg0: i32) -> (i32, i32) {
    %c0_i32 = arith.constant 0 : i32
    %c0_i32_0 = arith.constant 0 : i32
    %c0_i32_1 = arith.constant 0 : i32
    return %c0_i32, %c0_i32_0 : i32, i32
  }
  func.func @transform_4(%arg0: i32) -> (i32, i32) {
    %c0_i32 = arith.constant 0 : i32
    %c0_i32_0 = arith.constant 0 : i32
    %c0_i32_1 = arith.constant 0 : i32
    return %c0_i32, %c0_i32_0 : i32, i32
  }
  func.func @transform_5(%arg0: i32) -> (i32, i32) {
    %c0_i32 = arith.constant 0 : i32
    %c0_i32_0 = arith.constant 0 : i32
    return %arg0, %c0_i32 : i32, i32
  }
}

</mosaic_0001>

<bundles_post_ra>
// kernel: paper_fnn.1
= control target key start
LH: loop header
LB: loop body
LE: loop exit
PB: predicated region body
PF: predicated region fallthrough
CT: control target
= control target key end

     0   :  { %v274_v0 = vmov 0.0   ;;  %vm275_vm0 = vmmov 0   ;;  %vm46_vm1 = vcmask 261120   ;;  %s348_s1 = inlined_call_operand.vmem [shape: bf16[32,128], index: 1, kind: input, shape index: {}]   ;;  %s349_s0 = inlined_call_operand.vmem [shape: f32[8,32], index: 0, kind: input, shape index: {}]   ;;  %s350_s3 = inlined_call_operand.vmem [shape: bf16[128,128], index: 3, kind: input, shape index: {}]   ;;  %s351_s2 = inlined_call_operand.vmem [shape: f32[1,128], index: 2, kind: input, shape index: {}]   ;;  %s352_s4 = inlined_call_operand.vmem [shape: f32[1,128], index: 4, kind: input, shape index: {}]   ;;  %s353_s5 = inlined_call_operand.vmem [shape: bf16[8,128], index: 5, kind: output, shape index: {}]  }
   0x1   :  { %234 = vmatprep.subr.bf16.mxu0 %v274_v0  ;;  %v264_v1 = vld [vmem:[%s348_s1 + $0x8] sm:$0xff]   ;;  %238 = vmatprep.mubr.msk.bf16.mxu0 %vm275_vm0, %v274_v0  ;;  %v265_v2 = vld [vmem:[%s348_s1] sm:$0xff]   ;;  %v266_v4 = vld [vmem:[%s350_s3 + $0x38] sm:$0xff]  }
   0x2   :  { %242 = vmatprep.subr.bf16.mxu1 %v274_v0  ;;  %258 = vmatprep.mubr.msk.bf16.mxu1 %vm275_vm0, %v274_v0  ;;  %v21_v3 = vld [vmem:[%s349_s0] sm:$0xff]  ;;  %v267_v6 = vld [vmem:[%s350_s3 + $0x30] sm:$0xff]   ;;  %v268_v7 = vld [vmem:[%s350_s3 + $0x28] sm:$0xff]  }
   0x3   :  { %235 = vmatpush3.bf16.msra.mxu0 %v264_v1  ;;  %v22_v5 = vpack.c.bf16 %v21_v3, %v21_v3  ;;  %243 = vmatpush3.bf16.msra.mxu1 %v266_v4  ;;  %v269_v8 = vld [vmem:[%s350_s3 + $0x20] sm:$0xff]   ;;  %v270_v9 = vld [vmem:[%s350_s3 + $0x18] sm:$0xff]   ;;  %v271_v10 = vld [vmem:[%s350_s3 + $0x10] sm:$0xff]  }
   0x4   :  { %236 = vmatprep.subr.bf16.mxu0 %v274_v0  ;;  %244 = vmatprep.subr.bf16.mxu1 %v274_v0  ;;  %v272_v11 = vld [vmem:[%s350_s3 + $0x8] sm:$0xff]   ;;  %v273_v12 = vld [vmem:[%s350_s3] sm:$0xff]  }
   0x5   :  { %v209_v13 = vld [vmem:[%s351_s2] ss:$0 sm:$0xff] }
   0x6   :  { %v213_v21 = vld [vmem:[%s352_s4] ss:$0 sm:$0xff] }
   0x7   :  { %237 = vmatpush3.bf16.msra.mxu0 %v265_v2  ;;  %245 = vmatpush3.bf16.msra.mxu1 %v267_v6 }
   0x8   :  { %246 = vmatprep.subr.bf16.mxu1 %v274_v0 }
   0xa   :  { %239 = vmatmul.mubr.msk.bf16.vlgmr.msra.gmra.mxu0 %vm46_vm1, %v22_v5 }
   0xb   :  { %247 = vmatpush3.bf16.msra.mxu1 %v268_v7 }
   0xc   :  { %248 = vmatprep.subr.bf16.mxu1 %v274_v0 }
   0xf   :  { %249 = vmatpush3.bf16.msra.mxu1 %v269_v8 }
  0x10   :  { %250 = vmatprep.subr.bf16.mxu1 %v274_v0 }
  0x13   :  { %251 = vmatpush3.bf16.msra.mxu1 %v270_v9 }
  0x14   :  { %252 = vmatprep.subr.bf16.mxu1 %v274_v0 }
  0x17   :  { %253 = vmatpush3.bf16.msra.mxu1 %v271_v10 }
  0x18   :  { %254 = vmatprep.subr.bf16.mxu1 %v274_v0 }
  0x1b   :  { %255 = vmatpush3.bf16.msra.mxu1 %v272_v11 }
  0x1c   :  { %256 = vmatprep.subr.bf16.mxu1 %v274_v0 }
  0x1f   :  { %257 = vmatpush3.bf16.msra.mxu1 %v273_v12 }
  0xca   :  { %v84_v14 = vpop.f32.mrf.mxu0 }
  0xcb   :  { %v85_v15 = vadd.f32 %v209_v13, %v84_v14 }
  0xcc   :  { %v240_v16 = vpop.f32.mrf.mxu0 }
  0xcd   :  { %v90_v17 = vmax.f32 %v85_v15, 0.0 }
  0xce   :  { %v87_v18 = vpop.f32.mrf.mxu0 }
  0xcf   :  { %v91_v19 = vpack.c.bf16 %v90_v17, %v90_v17 }
  0xd0   :  { %v241_v20 = vpop.f32.mrf.mxu0 }
  0xd1   :  { %259 = vmatmul.mubr.bf16.vlgmr.msra.gmra.mxu1 %v91_v19 }
 0x191   :  { %v197_v22 = vpop.f32.mrf.mxu1 }
 0x192   :  { %v198_v23 = vadd.f32 %v213_v21, %v197_v22 }
 0x193   :  { %v260_v24 = vpop.f32.mrf.mxu1 }
 0x194   :  { %v203_v25 = vpack.c.bf16 %v198_v23, %v198_v23 }
 0x195   :  { %v200_v26 = vpop.f32.mrf.mxu1 }
 0x196   :  { %204 = vst [vmem:[%s353_s5] sm:$0xf] %v203_v25 }
 0x197   :  { %v261_v27 = vpop.f32.mrf.mxu1 }

</bundles_post_ra>
